<compile_context>
chip_gen: v7x
topology: tpu7x:2x2x1
jax: 0.10.0
libtpu: 0.0.40
codegen_flags: <defaults>
</compile_context>

<pallas_src>
import jax
import jax.numpy as jnp
from jax.experimental import pallas as pl
from jax.experimental.pallas import tpu as pltpu


_LANE_WIDTH = 512             # lane-dense last dim: large multiple of 128
_TARGET_TILE_BYTES = 4 << 20  # ~4 MiB per buffer: fits all TPU generations


def _logprob_kernel(scale_ref, x_ref, o_ref):
    # scale_ref: (1, 1) float32 scalar in SMEM holding -1 / (2 * w * w).
    # x_ref / o_ref: lane-dense VMEM tiles.  Pure VPU elementwise op.
    x = x_ref[...].astype(jnp.float32)
    o_ref[...] = (x * x * scale_ref[0, 0]).astype(o_ref.dtype)


def _round_up(a, b):
    return ((a + b - 1) // b) * b


def mcquad_logprob(x, w):
    """Compute -x*x / (2*w*w) with a Pallas TPU kernel. x: any shape/float dtype."""
    orig_shape = x.shape
    dtype = x.dtype
    itemsize = jnp.dtype(dtype).itemsize
    # dtype-aware sublane packing: 8 (f32), 16 (bf16), 32 (int8/fp8)
    sublane = max(8, 32 // itemsize)

    total = int(x.size)
    C = _LANE_WIDTH
    rows = pl.cdiv(total, C)
    rows_min = _round_up(rows, sublane)

    # Tile rows sized for ~_TARGET_TILE_BYTES per buffer, multiple of sublane.
    desired = max(sublane,
                  (_TARGET_TILE_BYTES // (C * itemsize)) // sublane * sublane)
    tile_rows = min(desired, rows_min)
    # Prefer >= 2 grid steps when the input allows it (v7x: 2 TCs per chip).
    if tile_rows >= rows_min and rows_min >= 2 * sublane:
        tile_rows = _round_up(pl.cdiv(rows_min, 2), sublane)

    rows_pad = _round_up(rows_min, tile_rows)
    grid = rows_pad // tile_rows

    flat = x.reshape(-1)
    pad = rows_pad * C - total
    if pad:
        flat = jnp.concatenate([flat, jnp.zeros((pad,), dtype=dtype)])
    x2d = flat.reshape(rows_pad, C)

    # Scale computed once, in float32 regardless of input dtype.
    w32 = jnp.asarray(w, dtype=jnp.float32)
    scale = (-0.5 / (w32 * w32)).reshape(1, 1)

    tile_bytes = tile_rows * C * itemsize
    vmem_limit = int(min(100 << 20, max(32 << 20, 6 * tile_bytes)))

    out2d = pl.pallas_call(
        _logprob_kernel,
        out_shape=jax.ShapeDtypeStruct((rows_pad, C), dtype),
        grid_spec=pltpu.PrefetchScalarGridSpec(
            num_scalar_prefetch=0,
            grid=(grid,),
            in_specs=[
                pl.BlockSpec(memory_space=pltpu.SMEM),           # scale scalar
                pl.BlockSpec((tile_rows, C), lambda i: (i, 0)),  # x tile
            ],
            out_specs=pl.BlockSpec((tile_rows, C), lambda i: (i, 0)),
        ),
        compiler_params=pltpu.CompilerParams(
            dimension_semantics=("parallel",),
            vmem_limit_bytes=vmem_limit,
        ),
    )(scale, x2d)

    return out2d.reshape(-1)[:total].reshape(orig_shape)


if __name__ == "__main__":
    key = jax.random.PRNGKey(0)
    w = 0.7  # module parameter (passed via __init__ in the PyTorch test)

    # Small 4-D batch of Monte-Carlo points.
    x = jax.random.normal(key, (2, 4, 16, 16), dtype=jnp.float32)
    y = jax.block_until_ready(mcquad_logprob(x, w))
    y_ref = -x * x / (2.0 * w * w)
    assert jnp.allclose(y, y_ref, atol=1e-6, rtol=1e-5), "mismatch vs reference (4-D)"

    # 1-D, non-multiple-of-128 input (previously broken path).
    x1 = jax.random.normal(jax.random.PRNGKey(1), (100,), dtype=jnp.float32)
    y1 = jax.block_until_ready(mcquad_logprob(x1, w))
    y1_ref = -x1 * x1 / (2.0 * w * w)
    assert jnp.allclose(y1, y1_ref, atol=1e-6, rtol=1e-5), "mismatch vs reference (1-D)"

    print("KERNEL_OK")
</pallas_src>

<mosaic_0001>
module attributes {stable_mosaic.version = 11 : i64} {
  func.func @_logprob_kernel(%arg0: i32, %arg1: memref<1x1xf32, #tpu.memory_space<smem>>, %arg2: memref<8x512xf32, #tpu.memory_space<vmem>>, %arg3: memref<8x512xf32, #tpu.memory_space<vmem>>) attributes {dimension_semantics = [#tpu.dimension_semantics<parallel>], iteration_bounds = array<i64: 1>, scalar_prefetch = 0 : i64, scratch_operands = 0 : i64, tpu.core_type = #tpu.core_type<tc>, window_params = [{transform_indices = @transform_0, window_bounds = array<i64: 1, 1>}, {transform_indices = @transform_1, window_bounds = array<i64: 8, 512>}, {transform_indices = @transform_2, window_bounds = array<i64: 8, 512>}]} {
    %c0 = arith.constant 0 : index
    %c0_0 = arith.constant 0 : index
    %0 = vector.load %arg2[%c0, %c0_0] : memref<8x512xf32, #tpu.memory_space<vmem>>, vector<8x512xf32>
    %1 = arith.mulf %0, %0 : vector<8x512xf32>
    %c0_1 = arith.constant 0 : index
    %c0_2 = arith.constant 0 : index
    %2 = memref.load %arg1[%c0_1, %c0_2] : memref<1x1xf32, #tpu.memory_space<smem>>
    %3 = vector.broadcast %2 : f32 to vector<8x512xf32>
    %4 = arith.mulf %1, %3 : vector<8x512xf32>
    %c0_3 = arith.constant 0 : index
    %c0_4 = arith.constant 0 : index
    %5 = vector.load %arg3[%c0_3, %c0_4] : memref<8x512xf32, #tpu.memory_space<vmem>>, vector<8x512xf32>
    tpu.vector_store %arg3[%c0_3, %c0_4], %4 {strides = array<i32>} : memref<8x512xf32, #tpu.memory_space<vmem>>, vector<8x512xf32>,
    return
  }
  func.func @transform_0(%arg0: i32) -> (i32, i32) {
    %c0_i32 = arith.constant 0 : i32
    %c0_i32_0 = arith.constant 0 : i32
    %c0_i32_1 = arith.constant 0 : i32
    return %c0_i32, %c0_i32_0 : i32, i32
  }
  func.func @transform_1(%arg0: i32) -> (i32, i32) {
    %c0_i32 = arith.constant 0 : i32
    %c0_i32_0 = arith.constant 0 : i32
    return %arg0, %c0_i32 : i32, i32
  }
  func.func @transform_2(%arg0: i32) -> (i32, i32) {
    %c0_i32 = arith.constant 0 : i32
    %c0_i32_0 = arith.constant 0 : i32
    return %arg0, %c0_i32 : i32, i32
  }
}

</mosaic_0001>

<bundles_post_ra>
// kernel: tpu_custom_call.1
= control target key start
LH: loop header
LB: loop body
LE: loop exit
PB: predicated region body
PF: predicated region fallthrough
CT: control target
= control target key end

     0   :  { %8 = vsyncpa [#allocation4], 0  ;;  %s152_s0 = inlined_call_operand.<no memory space> [shape: f32[1,1], index: 0, kind: input, shape index: {}]   ;;  %s153_s1 = inlined_call_operand.hbm [shape: f32[8,512], index: 1, kind: input, shape index: {}]   ;;  %s154_s2 = inlined_call_operand.hbm [shape: f32[8,512], index: 2, kind: output, shape index: {}]  }
   0x1   :  { %9 = vsyncpa [#allocation5], 0  ;;  %s108_s9 = smov [#allocation3]   ;;  %s60_s13 = scalar_lea.hbm %s153_s1, 512 }
   0x2   :  { %s18_s10 = sshll.u32 %s108_s9, 4  ;;  %p61_p0 = scmp.ne.s32.totalorder %s153_s1, %s60_s13  ;;  %s19_s10 = int_to_ptr.vmem [resolvable:$true] %s18_s10 }
   0x3   :  { %p64_p1 = scmp.lt.u32.totalorder %s60_s13, %s153_s1 }
   0x5   :  { %p66_p2 = pnand %p64_p1, %p61_p0 }
   0x7   :  { %69 = shalt.err (!%p66_p2)
}
   0x8   :  { %s70_s18 = scalar_lea.vmem %s19_s10, 512  ;;  %p75_p4 = scmp.lt.s32.totalorder %s19_s10, %s19_s10 }
   0x9   :  { %p71_p3 = scmp.ne.s32.totalorder %s19_s10, %s70_s18  ;;  %p76_p5 = scmp.lt.s32.totalorder %s70_s18, %s70_s18 }
   0xb   :  { %p77_p6 = por %p76_p5, %p75_p4 }
   0xd   :  { %p78_p7 = pnand %p77_p6, %p71_p3 }
   0xf   :  { %81 = shalt.err (!%p78_p7)
}
  0x10   :  { %21 = dma.hbm_to_vmem [thread:$0]  %s153_s1, 512, %s19_s10, [#allocation4]  }
  0x11   :  { %104 = dma.done.wait [#allocation4], 512  }
  0x12   :  { %105 = vsyncadd [#allocation4], 4294966784  ;;  %v25_v0 = vld [vmem:[#allocation3] sm:$0xff]  ;;  %v34_v1 = vstv %s152_s0  ;;  %v26_v2 = vld [vmem:[#allocation3 + $0x8] sm:$0xff]  ;;  %s109_s23 = smov [#allocation6]  }
  0x13   :  { %v27_v3 = vld [vmem:[#allocation3 + $0x10] sm:$0xff]  ;;  %v29_v4 = vmul.f32 %v25_v0, %v25_v0  ;;  %v30_v5 = vmul.f32 %v26_v2, %v26_v2  ;;  %v28_v7 = vld [vmem:[#allocation3 + $0x18] sm:$0xff]  ;;  %s49_s24 = sshll.u32 %s109_s23, 4  ;;  %s50_s24 = int_to_ptr.vmem [resolvable:$true] %s49_s24 }
  0x14   :  { %v31_v6 = vmul.f32 %v27_v3, %v27_v3  ;;  %v32_v8 = vmul.f32 %v28_v7, %v28_v7  ;;  %s82_s1 = scalar_lea.vmem %s50_s24, 512  ;;  %p87_p9 = scmp.lt.s32.totalorder %s50_s24, %s50_s24 }
  0x15   :  { %v35_v9 = vmul.f32 %v34_v1, %v29_v4  ;;  %v36_v10 = vmul.f32 %v34_v1, %v30_v5  ;;  %p83_p8 = scmp.ne.s32.totalorder %s50_s24, %s82_s1  ;;  %p88_p10 = scmp.lt.s32.totalorder %s82_s1, %s82_s1 }
  0x16   :  { %v37_v11 = vmul.f32 %v34_v1, %v31_v6  ;;  %v38_v12 = vmul.f32 %v34_v1, %v32_v8 }
  0x17   :  { %39 = vst [vmem:[#allocation6] sm:$0xff] %v35_v9  ;;  %40 = vst [vmem:[#allocation6 + $0x8] sm:$0xff] %v36_v10  ;;  %p89_p11 = por %p88_p10, %p87_p9 }
  0x18   :  { %41 = vst [vmem:[#allocation6 + $0x10] sm:$0xff] %v37_v11  ;;  %42 = vst [vmem:[#allocation6 + $0x18] sm:$0xff] %v38_v12 }
  0x19   :  { %p90_p12 = pnand %p89_p11, %p83_p8 }
  0x1b   :  { %93 = shalt.err (!%p90_p12)
}
  0x1c   :  { %s94_s26 = scalar_lea.hbm %s154_s2, 512 }
  0x1d   :  { %p95_p13 = scmp.ne.s32.totalorder %s154_s2, %s94_s26  ;;  %p98_p0 = scmp.lt.u32.totalorder %s94_s26, %s154_s2 }
  0x1f   :  { %p100_p1 = pnand %p98_p0, %p95_p13 }
  0x21   :  { %103 = shalt.err (!%p100_p1)
}
  0x22   :  { %52 = dma.vmem_to_hbm [thread:$0]  %s50_s24, 512, %s154_s2, [#allocation5]  }
  0x23   :  { %106 = dma.done.wait [#allocation5], 512  }
  0x24   :  { %107 = vsyncadd [#allocation5], 4294966784 }
  0x25   :  { %56 = vsyncpa [#allocation4], 1 }
  0x26   :  { %57 = vsyncpa [#allocation5], 1 }

</bundles_post_ra>
